<compile_context>
chip_gen: v5e
topology: v5e:2x2
jax: 0.10.0
libtpu: 0.0.40
codegen_flags: <defaults>
</compile_context>

<pallas_src>
import jax
import jax.numpy as jnp
from jax.experimental import pallas as pl
from jax.experimental.pallas import tpu as pltpu

HIDDEN_1 = 400
HIDDEN_2 = 300
LANE = 128


def _round_up(x, m):
    return ((x + m - 1) // m) * m


H1_PAD = _round_up(HIDDEN_1, LANE)  # 512
H2_PAD = _round_up(HIDDEN_2, LANE)  # 384

# Batches below this use the single-invocation latency path; at or above it
# we tile the batch (>= 2 tiles) so both v7x TensorCores get work.
_LATENCY_MAX_B = 256


def _mlp_folded(x, w1_ref, b1_ref, w2_ref, b2_ref, w3_ref):
    """Layers 1-2 plus the VPU part of layer 3.

    Returns `folded` of shape (tb, LANE) float32 such that
      q[b] = sum_over_lanes(folded[b, :]) + b3.
    """
    cdt = w1_ref.dtype  # MXU operand dtype (bf16 default, f32 optional)

    # Layer 1 (cat already folded into x / W1 by the wrapper).
    h1 = jnp.dot(x.astype(cdt), w1_ref[...], preferred_element_type=jnp.float32)
    h1 = jnp.maximum(h1 + b1_ref[...], 0.0)

    # Layer 2 (dominant matmul: tb x 512 x 384).
    h2 = jnp.dot(h1.astype(cdt), w2_ref[...], preferred_element_type=jnp.float32)
    h2 = jnp.maximum(h2 + b2_ref[...], 0.0)

    # Layer 3 head (out_features == 1): VPU multiply, then fold the
    # H2_PAD/LANE lane groups with VALU adds so only one 128-lane cross-lane
    # reduction remains (XLU pushes share slots with MXU pushes).
    t = h2 * w3_ref[...]                      # w3 kept f32, (1, H2_PAD) row
    folded = t[:, 0:LANE]
    for g in range(1, H2_PAD // LANE):
        folded = folded + t[:, g * LANE:(g + 1) * LANE]
    return folded


def critic_kernel_small(x_ref, w1_ref, b1_ref, w2_ref, b2_ref, w3_ref, b3_ref,
                        o_ref):
    # Latency path: whole arrays in VMEM, (B, 1) column output.
    folded = _mlp_folded(x_ref[...], w1_ref, b1_ref, w2_ref, b2_ref, w3_ref)
    q = jnp.sum(folded, axis=-1, keepdims=True) + b3_ref[...]      # (B, 1)
    o_ref[...] = q.astype(o_ref.dtype)


def critic_kernel_tiled(x_ref, w1_ref, b1_ref, w2_ref, b2_ref, w3_ref, b3_ref,
                        o_ref):
    # Throughput path: lane-dense (1, tb) output row.  tb is a multiple of
    # 128 on this path, so the (tb, 128) -> (128, tb) transpose is
    # tile-aligned and the sublane reduction lands directly in lane-major
    # layout (dense vst + dense HBM writeback).
    folded = _mlp_folded(x_ref[...], w1_ref, b1_ref, w2_ref, b2_ref, w3_ref)
    q_row = jnp.sum(folded.T, axis=0, keepdims=True) + b3_ref[...]  # (1, tb)
    o_ref[...] = q_row.astype(o_ref.dtype)


def init_critic_params(key, action_dim, state_dim):
    """Unpadded float32 params, mimicking nn.Linear default init
    U[-1/sqrt(fan_in), +1/sqrt(fan_in)]. Weights stored (in, out)."""
    dims = [(state_dim + action_dim, HIDDEN_1), (HIDDEN_1, HIDDEN_2), (HIDDEN_2, 1)]
    params = []
    for fan_in, fan_out in dims:
        key, kw, kb = jax.random.split(key, 3)
        bound = 1.0 / float(fan_in) ** 0.5
        w = jax.random.uniform(kw, (fan_in, fan_out), jnp.float32, -bound, bound)
        b = jax.random.uniform(kb, (1, fan_out), jnp.float32, -bound, bound)
        params.extend([w, b])
    return tuple(params)


def pack_critic_params(params, matmul_dtype=jnp.bfloat16):
    """Zero-pad hidden dims to lane multiples and cast the matmul weights to
    the MXU operand dtype (bf16 default; accumulation stays f32). Biases and
    the layer-3 row stay f32 (they feed the VPU, not the MXU)."""
    w1, b1, w2, b2, w3, b3 = params

    def pad_to(x, rows, cols):
        return jnp.pad(x, ((0, rows - x.shape[0]), (0, cols - x.shape[1])))

    w1_p = pad_to(w1, w1.shape[0], H1_PAD).astype(matmul_dtype)   # (S+A, 512)
    b1_p = pad_to(b1, 1, H1_PAD)                                  # (1, 512) f32
    w2_p = pad_to(w2, H1_PAD, H2_PAD).astype(matmul_dtype)        # (512, 384)
    b2_p = pad_to(b2, 1, H2_PAD)                                  # (1, 384) f32
    w3_r = pad_to(w3.T, 1, H2_PAD)                                # (1, 384) f32 row
    return (w1_p, b1_p, w2_p, b2_p, w3_r, b3)


def critic_forward(state, action, packed_params, *, block_b=2048):
    """Fused 3-layer critic MLP.

    B < 256  : single whole-array VMEM invocation (launch/DMA-latency bound).
    B >= 256 : batch-tiled grid with VMEM-resident weights (constant
               index_maps), an even number (>= 2) of batch tiles for v7x
               2-TC sharding, and lane-dense (1, tile) output rows.
    """
    w1, b1, w2, b2, w3_row, b3 = packed_params
    cdt = w1.dtype
    # Fold torch.cat into the wrapper and feed the MXU operand dtype directly
    # (no f32 upcast -> half the input DMA bytes when cdt is bf16).
    x = jnp.concatenate([state, action], axis=1).astype(cdt)
    B, K = x.shape
    weights = (w1, b1, w2, b2, w3_row, b3)

    if B < _LATENCY_MAX_B:
        vmem = pl.BlockSpec(memory_space=pltpu.MemorySpace.VMEM)
        return pl.pallas_call(
            critic_kernel_small,
            out_shape=jax.ShapeDtypeStruct((B, 1), jnp.float32),
            in_specs=[vmem] * 7,
            out_specs=vmem,
        )(x, *weights)

    # Throughput path.
    num_tiles = max(2, pl.cdiv(B, block_b))
    if num_tiles % 2:                      # even tile count -> balanced 2-TC split
        num_tiles += 1
    tb = _round_up(pl.cdiv(B, num_tiles), LANE)
    b_pad = num_tiles * tb
    if b_pad != B:
        x = jnp.pad(x, ((0, b_pad - B), (0, 0)))

    out = pl.pallas_call(
        critic_kernel_tiled,
        out_shape=jax.ShapeDtypeStruct((num_tiles, tb), jnp.float32),
        grid=(num_tiles,),
        in_specs=[
            pl.BlockSpec((tb, K), lambda i: (i, 0)),
            pl.BlockSpec((K, H1_PAD), lambda i: (0, 0)),
            pl.BlockSpec((1, H1_PAD), lambda i: (0, 0)),
            pl.BlockSpec((H1_PAD, H2_PAD), lambda i: (0, 0)),
            pl.BlockSpec((1, H2_PAD), lambda i: (0, 0)),
            pl.BlockSpec((1, H2_PAD), lambda i: (0, 0)),
            pl.BlockSpec((1, 1), lambda i: (0, 0)),
        ],
        out_specs=pl.BlockSpec((1, tb), lambda i: (i, 0)),
        compiler_params=pltpu.CompilerParams(
            dimension_semantics=("parallel",),
            # f32 h1/h2 temporaries at tb=2048 need more than v5e's 16 MiB
            # default scoped VMEM; 32 MiB is safe on v5e/v6e/v7x.
            vmem_limit_bytes=32 * 1024 * 1024,
        ),
    )(x, *weights)
    return out.reshape(-1, 1)[:B]


def critic_forward_ref(state, action, params):
    w1, b1, w2, b2, w3, b3 = params
    x = jnp.concatenate([state.astype(jnp.float32), action.astype(jnp.float32)],
                        axis=1)
    hp = jax.lax.Precision.HIGHEST
    h1 = jnp.maximum(jnp.dot(x, w1, precision=hp) + b1, 0.0)
    h2 = jnp.maximum(jnp.dot(h1, w2, precision=hp) + b2, 0.0)
    return jnp.dot(h2, w3, precision=hp) + b3


if __name__ == "__main__":
    state_dim = 16
    action_dim = 4

    key = jax.random.PRNGKey(0)
    k_params, k_s1, k_a1, k_s2, k_a2 = jax.random.split(key, 5)

    params = init_critic_params(k_params, action_dim, state_dim)
    packed_bf16 = pack_critic_params(params)                        # default bf16 MXU operands
    packed_f32 = pack_critic_params(params, matmul_dtype=jnp.float32)

    # Small batch -> latency path (single whole-array VMEM call, no grid).
    batch = 2
    state = jax.random.normal(k_s1, (batch, state_dim), jnp.float32)
    action = jax.random.normal(k_a1, (batch, action_dim), jnp.float32)
    q_ref = critic_forward_ref(state, action, params)

    q_f32 = jax.block_until_ready(critic_forward(state, action, packed_f32))
    assert q_f32.shape == (batch, 1)
    assert jnp.allclose(q_f32, q_ref, atol=2e-3, rtol=2e-3)

    q_bf16 = jax.block_until_ready(critic_forward(state, action, packed_bf16))
    assert q_bf16.shape == (batch, 1)
    # bf16 MXU operands (f32 accumulation): quantization error only.
    assert jnp.allclose(q_bf16, q_ref, atol=3e-2, rtol=3e-2)

    # Larger batch -> throughput path (2 batch tiles, resident weights,
    # lane-dense output rows); 300 is not a tile multiple -> exercises padding.
    batch2 = 300
    state2 = jax.random.normal(k_s2, (batch2, state_dim), jnp.float32)
    action2 = jax.random.normal(k_a2, (batch2, action_dim), jnp.float32)
    q2_ref = critic_forward_ref(state2, action2, params)

    q2_f32 = jax.block_until_ready(critic_forward(state2, action2, packed_f32))
    assert q2_f32.shape == (batch2, 1)
    assert jnp.allclose(q2_f32, q2_ref, atol=2e-3, rtol=2e-3)

    q2_bf16 = jax.block_until_ready(critic_forward(state2, action2, packed_bf16))
    assert q2_bf16.shape == (batch2, 1)
    assert jnp.allclose(q2_bf16, q2_ref, atol=3e-2, rtol=3e-2)

    print("KERNEL_OK")
</pallas_src>

<mosaic_0001>
module attributes {stable_mosaic.version = 11 : i64} {
  func.func @critic_kernel_small(%arg0: memref<2x20xf32, #tpu.memory_space<vmem>>, %arg1: memref<20x512xf32, #tpu.memory_space<vmem>>, %arg2: memref<1x512xf32, #tpu.memory_space<vmem>>, %arg3: memref<512x384xf32, #tpu.memory_space<vmem>>, %arg4: memref<1x384xf32, #tpu.memory_space<vmem>>, %arg5: memref<1x384xf32, #tpu.memory_space<vmem>>, %arg6: memref<1x1xf32, #tpu.memory_space<vmem>>, %arg7: memref<2x1xf32, #tpu.memory_space<vmem>>) attributes {dimension_semantics = [], scalar_prefetch = 0 : i64, scratch_operands = 0 : i64, tpu.core_type = #tpu.core_type<tc>} {
    %c0 = arith.constant 0 : index
    %c0_0 = arith.constant 0 : index
    %0 = vector.load %arg0[%c0, %c0_0] : memref<2x20xf32, #tpu.memory_space<vmem>>, vector<2x20xf32>
    %c0_1 = arith.constant 0 : index
    %c0_2 = arith.constant 0 : index
    %1 = vector.load %arg1[%c0_1, %c0_2] : memref<20x512xf32, #tpu.memory_space<vmem>>, vector<20x512xf32>
    %cst = arith.constant dense<0.000000e+00> : vector<2x512xf32>
    %2 = tpu.matmul %0, %1, %cst {dimension_numbers = #tpu.dot_dimension_numbers<[1], [0], [0], [1], [0, 0, 1, 1], [], []>} : vector<2x20xf32>, vector<20x512xf32>, vector<2x512xf32> -> vector<2x512xf32>
    %c0_3 = arith.constant 0 : index
    %c0_4 = arith.constant 0 : index
    %3 = vector.load %arg2[%c0_3, %c0_4] : memref<1x512xf32, #tpu.memory_space<vmem>>, vector<1x512xf32>
    %4 = vector.broadcast %3 : vector<1x512xf32> to vector<2x512xf32>
    %5 = arith.addf %2, %4 : vector<2x512xf32>
    %cst_5 = arith.constant 0.000000e+00 : f32
    %6 = vector.broadcast %cst_5 : f32 to vector<2x512xf32>
    %7 = arith.maximumf %5, %6 : vector<2x512xf32>
    %c0_6 = arith.constant 0 : index
    %c0_7 = arith.constant 0 : index
    %8 = vector.load %arg3[%c0_6, %c0_7] : memref<512x384xf32, #tpu.memory_space<vmem>>, vector<512x384xf32>
    %cst_8 = arith.constant dense<0.000000e+00> : vector<2x384xf32>
    %9 = tpu.matmul %7, %8, %cst_8 {dimension_numbers = #tpu.dot_dimension_numbers<[1], [0], [0], [1], [0, 0, 1, 1], [], []>} : vector<2x512xf32>, vector<512x384xf32>, vector<2x384xf32> -> vector<2x384xf32>
    %c0_9 = arith.constant 0 : index
    %c0_10 = arith.constant 0 : index
    %10 = vector.load %arg4[%c0_9, %c0_10] : memref<1x384xf32, #tpu.memory_space<vmem>>, vector<1x384xf32>
    %11 = vector.broadcast %10 : vector<1x384xf32> to vector<2x384xf32>
    %12 = arith.addf %9, %11 : vector<2x384xf32>
    %cst_11 = arith.constant 0.000000e+00 : f32
    %13 = vector.broadcast %cst_11 : f32 to vector<2x384xf32>
    %14 = arith.maximumf %12, %13 : vector<2x384xf32>
    %c0_12 = arith.constant 0 : index
    %c0_13 = arith.constant 0 : index
    %15 = vector.load %arg5[%c0_12, %c0_13] : memref<1x384xf32, #tpu.memory_space<vmem>>, vector<1x384xf32>
    %16 = vector.broadcast %15 : vector<1x384xf32> to vector<2x384xf32>
    %17 = arith.mulf %14, %16 : vector<2x384xf32>
    %18 = vector.extract_strided_slice %17 {offsets = [0, 0], sizes = [2, 128], strides = [1, 1]} : vector<2x384xf32> to vector<2x128xf32>
    %19 = vector.extract_strided_slice %17 {offsets = [0, 128], sizes = [2, 128], strides = [1, 1]} : vector<2x384xf32> to vector<2x128xf32>
    %20 = arith.addf %18, %19 : vector<2x128xf32>
    %21 = vector.extract_strided_slice %17 {offsets = [0, 256], sizes = [2, 128], strides = [1, 1]} : vector<2x384xf32> to vector<2x128xf32>
    %22 = arith.addf %20, %21 : vector<2x128xf32>
    %cst_14 = arith.constant dense<0.000000e+00> : vector<2xf32>
    %23 = vector.multi_reduction <add>, %22, %cst_14 [1] : vector<2x128xf32> to vector<2xf32>
    %24 = vector.shape_cast %23 : vector<2xf32> to vector<2x1xf32>
    %c0_15 = arith.constant 0 : index
    %c0_16 = arith.constant 0 : index
    %25 = vector.load %arg6[%c0_15, %c0_16] : memref<1x1xf32, #tpu.memory_space<vmem>>, vector<1x1xf32>
    %26 = vector.broadcast %25 : vector<1x1xf32> to vector<2x1xf32>
    %27 = arith.addf %24, %26 : vector<2x1xf32>
    %c0_17 = arith.constant 0 : index
    %c0_18 = arith.constant 0 : index
    %28 = vector.load %arg7[%c0_17, %c0_18] : memref<2x1xf32, #tpu.memory_space<vmem>>, vector<2x1xf32>
    tpu.vector_store %arg7[%c0_17, %c0_18], %27 {strides = array<i32>} : memref<2x1xf32, #tpu.memory_space<vmem>>, vector<2x1xf32>,
    return
  }
}

</mosaic_0001>

<bundles_post_ra>
// kernel: tpu_custom_call.1
= control target key start
LH: loop header
LB: loop body
LE: loop exit
PB: predicated region body
PF: predicated region fallthrough
CT: control target
= control target key end

     0   :  { %s896_s0 = inlined_call_operand.hbm [shape: f32[2,20], index: 0, kind: input, shape index: {}]   ;;  %s897_s1 = inlined_call_operand.hbm [shape: f32[20,512], index: 1, kind: input, shape index: {}]   ;;  %s898_s2 = inlined_call_operand.hbm [shape: f32[1,512], index: 2, kind: input, shape index: {}]   ;;  %s899_s3 = inlined_call_operand.hbm [shape: f32[512,384], index: 3, kind: input, shape index: {}]   ;;  %s900_s4 = inlined_call_operand.vmem [shape: f32[1,384], index: 4, kind: input, shape index: {}]   ;;  %s901_s5 = inlined_call_operand.vmem [shape: f32[1,384], index: 5, kind: input, shape index: {}]   ;;  %s902_s6 = inlined_call_operand.<no memory space> [shape: f32[1,1], index: 6, kind: input, shape index: {}]   ;;  %s903_s7 = inlined_call_operand.vmem [shape: f32[2,1], index: 7, kind: output, shape index: {}]  }
   0x1   :  { %v12_v0 = vstv %s902_s6 }
   0x2   :  { %13 = vst [vmem:[#allocation2] sm:$0x1] %v12_v0 }
   0x3   :  { %14 = vsyncpa [#allocation4], 0 }
   0x4   :  { %15 = vsyncpa [#allocation6], 0  ;;  %s32_s28 = sshll.u32 %s897_s1, 4  ;;  %s33_s28 = int_to_ptr.hbm [resolvable:$true] %s32_s28 }
   0x5   :  { %16 = vsyncpa [#allocation9], 0  ;;  %s804_s29 = smov [#allocation5]   ;;  %s22_s10 = sshll.u32 %s896_s0, 4  ;;  %s23_s10 = int_to_ptr.hbm [resolvable:$true] %s22_s10 }
   0x6   :  { %s34_s30 = sshll.u32 %s804_s29, 4  ;;  %s805_s11 = smov 512   ;;  %s35_s30 = int_to_ptr.vmem [resolvable:$true] %s34_s30 }
   0x7   :  { %s806_s12 = smov 32   ;;  %s807_s6 = smov [#allocation3]  }
   0x8   :  { %40 = dma.hbm_to_vmem [thread:$0]  %s33_s28, 1536, %s35_s30, [#allocation6], %s805_s11, %s805_s11, %s806_s12  }
   0x9   :  { %s24_s13 = sshll.u32 %s807_s6, 4  ;;  %s46_s16 = sshll.u32 %s898_s2, 4  ;;  %s25_s13 = int_to_ptr.vmem [resolvable:$true] %s24_s13  ;;  %s47_s16 = int_to_ptr.hbm [resolvable:$true] %s46_s16 }
   0xa   :  { %27 = dma.hbm_to_vmem [thread:$0]  %s23_s10, 32, %s25_s13, [#allocation4]  }
   0xb   :  { %s56_s18 = sshll.u32 %s899_s3, 4  ;;  %s808_s19 = smov [#allocation7]   ;;  %s57_s18 = int_to_ptr.hbm [resolvable:$true] %s56_s18 }
   0xc   :  { %s48_s20 = sshll.u32 %s808_s19, 4  ;;  %s809_s0 = smov [#allocation8]   ;;  %s49_s20 = int_to_ptr.vmem [resolvable:$true] %s48_s20 }
   0xd   :  { %51 = dma.hbm_to_vmem [thread:$0]  %s47_s16, 64, %s49_s20, [#allocation6]  }
   0xe   :  { %s58_s21 = sshll.u32 %s809_s0, 4  ;;  %s810_s22 = smov 384   ;;  %s59_s21 = int_to_ptr.vmem [resolvable:$true] %s58_s21 }
   0xf   :  { %s811_s23 = smov 24  }
  0x10   :  { %64 = dma.hbm_to_vmem [thread:$0]  %s57_s18, 24576, %s59_s21, [#allocation9], %s810_s22, %s810_s22, %s811_s23  }
  0x11   :  { %798 = dma.done.wait [#allocation4], 32  }
  0x12   :  { %799 = vsyncadd [#allocation4], 4294967264 }
  0x13   :  { %800 = dma.done.wait [#allocation6], 1600  }
  0x14   :  { %801 = vsyncadd [#allocation6], 4294965696 }
  0x15   :  { %802 = dma.done.wait [#allocation9], 24576  }
  0x16   :  { %803 = vsyncadd [#allocation9], 4294942720  ;;  %vm114_vm0 = vcmask 1043456   ;;  %v96_v1 = vld [vmem:[#allocation5 + $0x40] sm:$0xf]  ;;  %v93_v6 = vld [vmem:[#allocation5 + $0x28] sm:$0xff] }
  0x17   :  { %v97_v2 = vld [vmem:[#allocation5 + $0x48] sm:$0xf]  ;;  %v98_v3 = vld [vmem:[#allocation5 + $0x50] sm:$0xf]  ;;  %685 = vmatpush.msk.msra.mxu0 %vm114_vm0, %v96_v1  ;;  %v99_v4 = vld [vmem:[#allocation5 + $0x58] sm:$0xf] }
  0x18   :  { %687 = vmatpush.msk.msra.mxu1 %vm114_vm0, %v97_v2  ;;  %v92_v5 = vld [vmem:[#allocation5 + $0x20] sm:$0xff]  ;;  %689 = vmatpush.msk.msra.mxu2 %vm114_vm0, %v98_v3  ;;  %v94_v7 = vld [vmem:[#allocation5 + $0x30] sm:$0xff]  ;;  %v95_v8 = vld [vmem:[#allocation5 + $0x38] sm:$0xff]  ;;  %vm110_vm1 = vcmask 162816   ;;  %vm667_vm2 = vcmask 1041408   ;;  %vm676_vm3 = vcmask 1024  }
  0x19   :  { %691 = vmatpush.msk.msra.mxu3 %vm114_vm0, %v99_v4  ;;  %v88_v9 = vld [vmem:[#allocation5] sm:$0xff]  ;;  %141 = vmatpush.msra.mxu0 %v92_v5  ;;  %v89_v10 = vld [vmem:[#allocation5 + $0x8] sm:$0xff]  ;;  %v90_v11 = vld [vmem:[#allocation5 + $0x10] sm:$0xff] }
  0x1a   :  { %161 = vmatpush.msra.mxu1 %v93_v6  ;;  %v91_v12 = vld [vmem:[#allocation5 + $0x18] sm:$0xff]  ;;  %181 = vmatpush.msra.mxu2 %v94_v7  ;;  %v256_v14 = vld [vmem:[#allocation8 + $0x168] sm:$0xff]  ;;  %v247_v26 = vld [vmem:[#allocation8 + $0x120] sm:$0xff] }
  0x1b   :  { %201 = vmatpush.msra.mxu3 %v95_v8  ;;  %v87_v13 = vld [vmem:[#allocation3] sm:$0x3]  ;;  %142 = vmatpush.msra.mxu0 %v88_v9  ;;  %v304_v15 = vld [vmem:[#allocation8 + $0x2e8] sm:$0xff]  ;;  %v253_v18 = vld [vmem:[#allocation8 + $0x150] sm:$0xff] }
  0x1c   :  { %162 = vmatpush.msra.mxu1 %v89_v10  ;;  %182 = vmatpush.msra.mxu2 %v90_v11  ;;  %v352_v16 = vld [vmem:[#allocation8 + $0x468] sm:$0xff]  ;;  %v301_v19 = vld [vmem:[#allocation8 + $0x2d0] sm:$0xff]  ;;  %v250_v22 = vld [vmem:[#allocation8 + $0x138] sm:$0xff] }
  0x1d   :  { %202 = vmatpush.msra.mxu3 %v91_v12  ;;  %686 = vmatmul.msk.f32.vlgmr.msra.gmra.mxu0 %vm110_vm1, %v87_v13  ;;  %v400_v17 = vld [vmem:[#allocation8 + $0x5e8] sm:$0xff]  ;;  %v349_v20 = vld [vmem:[#allocation8 + $0x450] sm:$0xff]  ;;  %v298_v23 = vld [vmem:[#allocation8 + $0x2b8] sm:$0xff] }
  0x1e   :  { %688 = vmatmul.msk.f32.vlgmr.msra.gmra.mxu1 %vm110_vm1, %v87_v13  ;;  %690 = vmatmul.msk.f32.vlgmr.msra.gmra.mxu2 %vm110_vm1, %v87_v13  ;;  %v397_v21 = vld [vmem:[#allocation8 + $0x5d0] sm:$0xff]  ;;  %v346_v24 = vld [vmem:[#allocation8 + $0x438] sm:$0xff]  ;;  %v295_v27 = vld [vmem:[#allocation8 + $0x2a0] sm:$0xff] }
  0x1f   :  { %692 = vmatmul.msk.f32.vlgmr.msra.gmra.mxu3 %vm110_vm1, %v87_v13  ;;  %411 = vmatpush.msrb.mxu0 %v256_v14  ;;  %v394_v25 = vld [vmem:[#allocation8 + $0x5b8] sm:$0xff]  ;;  %v343_v28 = vld [vmem:[#allocation8 + $0x420] sm:$0xff]  ;;  %v244_v30 = vld [vmem:[#allocation8 + $0x108] sm:$0xff] }
  0x20   :  { %431 = vmatpush.msrb.mxu1 %v304_v15  ;;  %451 = vmatpush.msrb.mxu2 %v352_v16  ;;  %v391_v29 = vld [vmem:[#allocation8 + $0x5a0] sm:$0xff]  ;;  %v292_v31 = vld [vmem:[#allocation8 + $0x288] sm:$0xff]  ;;  %v241_v34 = vld [vmem:[#allocation8 + $0xf0] sm:$0xff] }
  0x21   :  { %471 = vmatpush.msrb.mxu3 %v400_v17  ;;  %412 = vmatpush.msrb.mxu0 %v253_v18  ;;  %v340_v32 = vld [vmem:[#allocation8 + $0x408] sm:$0xff]  ;;  %v289_v35 = vld [vmem:[#allocation8 + $0x270] sm:$0xff]  ;;  %v238_v38 = vld [vmem:[#allocation8 + $0xd8] sm:$0xff] }
  0x22   :  { %432 = vmatpush.msrb.mxu1 %v301_v19  ;;  %452 = vmatpush.msrb.mxu2 %v349_v20  ;;  %v388_v33 = vld [vmem:[#allocation8 + $0x588] sm:$0xff]  ;;  %v337_v36 = vld [vmem:[#allocation8 + $0x3f0] sm:$0xff]  ;;  %v286_v39 = vld [vmem:[#allocation8 + $0x258] sm:$0xff] }
  0x23   :  { %472 = vmatpush.msrb.mxu3 %v397_v21  ;;  %413 = vmatpush.msrb.mxu0 %v250_v22  ;;  %v385_v37 = vld [vmem:[#allocation8 + $0x570] sm:$0xff]  ;;  %v334_v40 = vld [vmem:[#allocation8 + $0x3d8] sm:$0xff]  ;;  %v235_v42 = vld [vmem:[#allocation8 + $0xc0] sm:$0xff] }
  0x24   :  { %433 = vmatpush.msrb.mxu1 %v298_v23  ;;  %453 = vmatpush.msrb.mxu2 %v346_v24  ;;  %v382_v41 = vld [vmem:[#allocation8 + $0x558] sm:$0xff]  ;;  %v283_v43 = vld [vmem:[#allocation8 + $0x240] sm:$0xff]  ;;  %v232_v46 = vld [vmem:[#allocation8 + $0xa8] sm:$0xff] }
  0x25   :  { %473 = vmatpush.msrb.mxu3 %v394_v25  ;;  %414 = vmatpush.msrb.mxu0 %v247_v26  ;;  %v331_v44 = vld [vmem:[#allocation8 + $0x3c0] sm:$0xff]  ;;  %v280_v47 = vld [vmem:[#allocation8 + $0x228] sm:$0xff]  ;;  %v229_v50 = vld [vmem:[#allocation8 + $0x90] sm:$0xff] }
  0x26   :  { %434 = vmatpush.msrb.mxu1 %v295_v27  ;;  %454 = vmatpush.msrb.mxu2 %v343_v28  ;;  %v379_v45 = vld [vmem:[#allocation8 + $0x540] sm:$0xff]  ;;  %v328_v48 = vld [vmem:[#allocation8 + $0x3a8] sm:$0xff]  ;;  %v277_v51 = vld [vmem:[#allocation8 + $0x210] sm:$0xff] }
  0x27   :  { %474 = vmatpush.msrb.mxu3 %v391_v29  ;;  %415 = vmatpush.msrb.mxu0 %v244_v30  ;;  %v376_v49 = vld [vmem:[#allocation8 + $0x528] sm:$0xff]  ;;  %v325_v52 = vld [vmem:[#allocation8 + $0x390] sm:$0xff]  ;;  %v226_v54 = vld [vmem:[#allocation8 + $0x78] sm:$0xff] }
  0x28   :  { %435 = vmatpush.msrb.mxu1 %v292_v31  ;;  %455 = vmatpush.msrb.mxu2 %v340_v32  ;;  %v373_v53 = vld [vmem:[#allocation8 + $0x510] sm:$0xff]  ;;  %v274_v55 = vld [vmem:[#allocation8 + $0x1f8] sm:$0xff]  ;;  %v223_v58 = vld [vmem:[#allocation8 + $0x60] sm:$0xff] }
  0x29   :  { %475 = vmatpush.msrb.mxu3 %v388_v33  ;;  %416 = vmatpush.msrb.mxu0 %v241_v34  ;;  %v322_v56 = vld [vmem:[#allocation8 + $0x378] sm:$0xff]  ;;  %v271_v59 = vld [vmem:[#allocation8 + $0x1e0] sm:$0xff]  ;;  %v220_v62 = vld [vmem:[#allocation8 + $0x48] sm:$0xff] }
  0x2a   :  { %436 = vmatpush.msrb.mxu1 %v289_v35  ;;  %456 = vmatpush.msrb.mxu2 %v337_v36  ;;  %v370_v57 = vld [vmem:[#allocation8 + $0x4f8] sm:$0xff]  ;;  %v319_v60 = vld [vmem:[#allocation8 + $0x360] sm:$0xff]  ;;  %v268_v63 = vld [vmem:[#allocation8 + $0x1c8] sm:$0xff] }
  0x2b   :  { %476 = vmatpush.msrb.mxu3 %v385_v37  ;;  %417 = vmatpush.msrb.mxu0 %v238_v38  ;;  %v367_v61 = vld [vmem:[#allocation8 + $0x4e0] sm:$0xff]  ;;  %v316_v0 = vld [vmem:[#allocation8 + $0x348] sm:$0xff]  ;;  %v217_v2 = vld [vmem:[#allocation8 + $0x30] sm:$0xff] }
  0x2c   :  { %437 = vmatpush.msrb.mxu1 %v286_v39  ;;  %457 = vmatpush.msrb.mxu2 %v334_v40  ;;  %v364_v1 = vld [vmem:[#allocation8 + $0x4c8] sm:$0xff]  ;;  %v265_v3 = vld [vmem:[#allocation8 + $0x1b0] sm:$0xff]  ;;  %v214_v6 = vld [vmem:[#allocation8 + $0x18] sm:$0xff] }
  0x2d   :  { %477 = vmatpush.msrb.mxu3 %v382_v41  ;;  %418 = vmatpush.msrb.mxu0 %v235_v42  ;;  %v313_v4 = vld [vmem:[#allocation8 + $0x330] sm:$0xff]  ;;  %v262_v7 = vld [vmem:[#allocation8 + $0x198] sm:$0xff]  ;;  %v211_v10 = vld [vmem:[#allocation8] sm:$0xff] }
  0x2e   :  { %438 = vmatpush.msrb.mxu1 %v283_v43  ;;  %458 = vmatpush.msrb.mxu2 %v331_v44  ;;  %v361_v5 = vld [vmem:[#allocation8 + $0x4b0] sm:$0xff]  ;;  %v310_v8 = vld [vmem:[#allocation8 + $0x318] sm:$0xff]  ;;  %v259_v11 = vld [vmem:[#allocation8 + $0x180] sm:$0xff] }
  0x2f   :  { %478 = vmatpush.msrb.mxu3 %v379_v45  ;;  %419 = vmatpush.msrb.mxu0 %v232_v46  ;;  %v358_v9 = vld [vmem:[#allocation8 + $0x498] sm:$0xff]  ;;  %v257_v12 = vld [vmem:[#allocation8 + $0x170] sm:$0xff]  ;;  %v307_v14 = vld [vmem:[#allocation8 + $0x300] sm:$0xff] }
  0x30   :  { %439 = vmatpush.msrb.mxu1 %v280_v47  ;;  %459 = vmatpush.msrb.mxu2 %v328_v48  ;;  %v305_v13 = vld [vmem:[#allocation8 + $0x2f0] sm:$0xff]  ;;  %v355_v15 = vld [vmem:[#allocation8 + $0x480] sm:$0xff]  ;;  %v254_v16 = vld [vmem:[#allocation8 + $0x158] sm:$0xff] }
  0x31   :  { %479 = vmatpush.msrb.mxu3 %v376_v49  ;;  %420 = vmatpush.msrb.mxu0 %v229_v50  ;;  %v302_v17 = vld [vmem:[#allocation8 + $0x2d8] sm:$0xff]  ;;  %v353_v18 = vld [vmem:[#allocation8 + $0x470] sm:$0xff]  ;;  %v251_v20 = vld [vmem:[#allocation8 + $0x140] sm:$0xff] }
  0x32   :  { %440 = vmatpush.msrb.mxu1 %v277_v51  ;;  %460 = vmatpush.msrb.mxu2 %v325_v52  ;;  %v401_v19 = vld [vmem:[#allocation8 + $0x5f0] sm:$0xff]  ;;  %v299_v21 = vld [vmem:[#allocation8 + $0x2c0] sm:$0xff]  ;;  %v350_v22 = vld [vmem:[#allocation8 + $0x458] sm:$0xff] }
  0x33   :  { %480 = vmatpush.msrb.mxu3 %v373_v53  ;;  %421 = vmatpush.msrb.mxu0 %v226_v54  ;;  %v398_v23 = vld [vmem:[#allocation8 + $0x5d8] sm:$0xff]  ;;  %v248_v24 = vld [vmem:[#allocation8 + $0x128] sm:$0xff]  ;;  %v347_v26 = vld [vmem:[#allocation8 + $0x440] sm:$0xff] }
  0x34   :  { %441 = vmatpush.msrb.mxu1 %v274_v55  ;;  %461 = vmatpush.msrb.mxu2 %v322_v56  ;;  %v296_v25 = vld [vmem:[#allocation8 + $0x2a8] sm:$0xff]  ;;  %v395_v27 = vld [vmem:[#allocation8 + $0x5c0] sm:$0xff]  ;;  %v245_v28 = vld [vmem:[#allocation8 + $0x110] sm:$0xff] }
  0x35   :  { %481 = vmatpush.msrb.mxu3 %v370_v57  ;;  %422 = vmatpush.msrb.mxu0 %v223_v58  ;;  %v293_v29 = vld [vmem:[#allocation8 + $0x290] sm:$0xff]  ;;  %v344_v30 = vld [vmem:[#allocation8 + $0x428] sm:$0xff]  ;;  %v242_v32 = vld [vmem:[#allocation8 + $0xf8] sm:$0xff] }
  0x36   :  { %442 = vmatpush.msrb.mxu1 %v271_v59  ;;  %462 = vmatpush.msrb.mxu2 %v319_v60  ;;  %v392_v31 = vld [vmem:[#allocation8 + $0x5a8] sm:$0xff]  ;;  %v290_v33 = vld [vmem:[#allocation8 + $0x278] sm:$0xff]  ;;  %v341_v34 = vld [vmem:[#allocation8 + $0x410] sm:$0xff] }
  0x37   :  { %482 = vmatpush.msrb.mxu3 %v367_v61  ;;  %423 = vmatpush.msrb.mxu0 %v220_v62  ;;  %v389_v35 = vld [vmem:[#allocation8 + $0x590] sm:$0xff]  ;;  %v239_v36 = vld [vmem:[#allocation8 + $0xe0] sm:$0xff]  ;;  %v338_v38 = vld [vmem:[#allocation8 + $0x3f8] sm:$0xff] }
  0x38   :  { %443 = vmatpush.msrb.mxu1 %v268_v63  ;;  %463 = vmatpush.msrb.mxu2 %v316_v0  ;;  %v287_v37 = vld [vmem:[#allocation8 + $0x260] sm:$0xff]  ;;  %v386_v39 = vld [vmem:[#allocation8 + $0x578] sm:$0xff]  ;;  %v236_v40 = vld [vmem:[#allocation8 + $0xc8] sm:$0xff] }
  0x39   :  { %483 = vmatpush.msrb.mxu3 %v364_v1  ;;  %424 = vmatpush.msrb.mxu0 %v217_v2  ;;  %v284_v41 = vld [vmem:[#allocation8 + $0x248] sm:$0xff]  ;;  %v335_v42 = vld [vmem:[#allocation8 + $0x3e0] sm:$0xff]  ;;  %v233_v44 = vld [vmem:[#allocation8 + $0xb0] sm:$0xff] }
  0x3a   :  { %444 = vmatpush.msrb.mxu1 %v265_v3  ;;  %464 = vmatpush.msrb.mxu2 %v313_v4  ;;  %v383_v43 = vld [vmem:[#allocation8 + $0x560] sm:$0xff]  ;;  %v281_v45 = vld [vmem:[#allocation8 + $0x230] sm:$0xff]  ;;  %v332_v46 = vld [vmem:[#allocation8 + $0x3c8] sm:$0xff] }
  0x3b   :  { %484 = vmatpush.msrb.mxu3 %v361_v5  ;;  %425 = vmatpush.msrb.mxu0 %v214_v6  ;;  %v380_v47 = vld [vmem:[#allocation8 + $0x548] sm:$0xff]  ;;  %v230_v48 = vld [vmem:[#allocation8 + $0x98] sm:$0xff]  ;;  %v329_v50 = vld [vmem:[#allocation8 + $0x3b0] sm:$0xff] }
  0x3c   :  { %445 = vmatpush.msrb.mxu1 %v262_v7  ;;  %465 = vmatpush.msrb.mxu2 %v310_v8  ;;  %v278_v49 = vld [vmem:[#allocation8 + $0x218] sm:$0xff]  ;;  %v377_v51 = vld [vmem:[#allocation8 + $0x530] sm:$0xff]  ;;  %v227_v52 = vld [vmem:[#allocation8 + $0x80] sm:$0xff] }
  0x3d   :  { %485 = vmatpush.msrb.mxu3 %v358_v9  ;;  %426 = vmatpush.msrb.mxu0 %v211_v10  ;;  %v275_v53 = vld [vmem:[#allocation8 + $0x200] sm:$0xff]  ;;  %v326_v54 = vld [vmem:[#allocation8 + $0x398] sm:$0xff]  ;;  %v224_v56 = vld [vmem:[#allocation8 + $0x68] sm:$0xff] }
  0x3e   :  { %446 = vmatpush.msrb.mxu1 %v259_v11  ;;  %466 = vmatpush.msrb.mxu2 %v307_v14  ;;  %v374_v55 = vld [vmem:[#allocation8 + $0x518] sm:$0xff]  ;;  %v272_v57 = vld [vmem:[#allocation8 + $0x1e8] sm:$0xff]  ;;  %v221_v58 = vld [vmem:[#allocation8 + $0x50] sm:$0xff] }
  0x3f   :  { %491 = vmatpush.msra.mxu0 %v257_v12  ;;  %486 = vmatpush.msrb.mxu3 %v355_v15  ;;  %v269_v59 = vld [vmem:[#allocation8 + $0x1d0] sm:$0xff]  ;;  %v218_v60 = vld [vmem:[#allocation8 + $0x38] sm:$0xff]  ;;  %v323_v62 = vld [vmem:[#allocation8 + $0x380] sm:$0xff] }
  0x40   :  { %511 = vmatpush.msra.mxu1 %v305_v13  ;;  %531 = vmatpush.msra.mxu2 %v353_v18  ;;  %v266_v61 = vld [vmem:[#allocation8 + $0x1b8] sm:$0xff]  ;;  %v371_v63 = vld [vmem:[#allocation8 + $0x500] sm:$0xff]  ;;  %v320_v2 = vld [vmem:[#allocation8 + $0x368] sm:$0xff] }
  0x41   :  { %492 = vmatpush.msra.mxu0 %v254_v16  ;;  %551 = vmatpush.msra.mxu3 %v401_v19  ;;  %v215_v0 = vld [vmem:[#allocation8 + $0x20] sm:$0xff]  ;;  %v368_v3 = vld [vmem:[#allocation8 + $0x4e8] sm:$0xff]  ;;  %v317_v6 = vld [vmem:[#allocation8 + $0x350] sm:$0xff] }
  0x42   :  { %512 = vmatpush.msra.mxu1 %v302_v17  ;;  %532 = vmatpush.msra.mxu2 %v350_v22  ;;  %v263_v1 = vld [vmem:[#allocation8 + $0x1a0] sm:$0xff]  ;;  %v212_v4 = vld [vmem:[#allocation8 + $0x8] sm:$0xff]  ;;  %v365_v7 = vld [vmem:[#allocation8 + $0x4d0] sm:$0xff] }
  0x43   :  { %493 = vmatpush.msra.mxu0 %v251_v20  ;;  %552 = vmatpush.msra.mxu3 %v398_v23  ;;  %v260_v5 = vld [vmem:[#allocation8 + $0x188] sm:$0xff]  ;;  %v314_v8 = vld [vmem:[#allocation8 + $0x338] sm:$0xff]  ;;  %v311_v10 = vld [vmem:[#allocation8 + $0x320] sm:$0xff] }
  0x44   :  { %513 = vmatpush.msra.mxu1 %v299_v21  ;;  %533 = vmatpush.msra.mxu2 %v347_v26  ;;  %v362_v9 = vld [vmem:[#allocation8 + $0x4b8] sm:$0xff]  ;;  %v359_v11 = vld [vmem:[#allocation8 + $0x4a0] sm:$0xff]  ;;  %v308_v12 = vld [vmem:[#allocation8 + $0x308] sm:$0xff] }
  0x45   :  { %494 = vmatpush.msra.mxu0 %v248_v24  ;;  %553 = vmatpush.msra.mxu3 %v395_v27  ;;  %v356_v13 = vld [vmem:[#allocation8 + $0x488] sm:$0xff]  ;;  %v100_v14 = vld [vmem:[#allocation7] sm:$0xf]  ;;  %v255_v27 = vld [vmem:[#allocation8 + $0x160] sm:$0xff] }
  0x46   :  { %514 = vmatpush.msra.mxu1 %v296_v25  ;;  %534 = vmatpush.msra.mxu2 %v344_v30  ;;  %v102_v15 = vperm.slane %v100_v14, 0  ;;  %v103_v16 = vperm.slane %v100_v14, 1  ;;  %v258_v23 = vld [vmem:[#allocation8 + $0x178] sm:$0xff]  ;;  %v104_v25 = vperm.slane %v100_v14, 2  ;;  %v105_v26 = vperm.slane %v100_v14, 3  ;;  %v267_v14 = vld [vmem:[#allocation8 + $0x1c0] sm:$0xff] }
  0x47   :  { %495 = vmatpush.msra.mxu0 %v245_v28  ;;  %554 = vmatpush.msra.mxu3 %v392_v31  ;;  %v306_v24 = vld [vmem:[#allocation8 + $0x2f8] sm:$0xff]  ;;  %v303_v28 = vld [vmem:[#allocation8 + $0x2e0] sm:$0xff]  ;;  %v252_v31 = vld [vmem:[#allocation8 + $0x148] sm:$0xff] }
  0x48   :  { %515 = vmatpush.msra.mxu1 %v293_v29  ;;  %535 = vmatpush.msra.mxu2 %v341_v34 }
  0x49   :  { %496 = vmatpush.msra.mxu0 %v242_v32  ;;  %555 = vmatpush.msra.mxu3 %v389_v35  ;;  %v300_v32 = vld [vmem:[#allocation8 + $0x2c8] sm:$0xff] }
  0x4a   :  { %516 = vmatpush.msra.mxu1 %v290_v33  ;;  %536 = vmatpush.msra.mxu2 %v338_v38  ;;  %v297_v38 = vld [vmem:[#allocation8 + $0x2b0] sm:$0xff] }
  0x4b   :  { %497 = vmatpush.msra.mxu0 %v239_v36  ;;  %556 = vmatpush.msra.mxu3 %v386_v39  ;;  %v354_v39 = vld [vmem:[#allocation8 + $0x478] sm:$0xff] }
  0x4c   :  { %517 = vmatpush.msra.mxu1 %v287_v37  ;;  %537 = vmatpush.msra.mxu2 %v335_v42  ;;  %v249_v37 = vld [vmem:[#allocation8 + $0x130] sm:$0xff]  ;;  %v246_v42 = vld [vmem:[#allocation8 + $0x118] sm:$0xff] }
  0x4d   :  { %498 = vmatpush.msra.mxu0 %v236_v40  ;;  %557 = vmatpush.msra.mxu3 %v383_v43  ;;  %v402_v40 = vld [vmem:[#allocation8 + $0x5f8] sm:$0xff]  ;;  %v351_v43 = vld [vmem:[#allocation8 + $0x460] sm:$0xff] }
  0x4e   :  { %518 = vmatpush.msra.mxu1 %v284_v41  ;;  %538 = vmatpush.msra.mxu2 %v332_v46  ;;  %v294_v41 = vld [vmem:[#allocation8 + $0x298] sm:$0xff]  ;;  %v291_v46 = vld [vmem:[#allocation8 + $0x280] sm:$0xff] }
  0x4f   :  { %499 = vmatpush.msra.mxu0 %v233_v44  ;;  %558 = vmatpush.msra.mxu3 %v380_v47  ;;  %v399_v44 = vld [vmem:[#allocation8 + $0x5e0] sm:$0xff]  ;;  %v348_v47 = vld [vmem:[#allocation8 + $0x448] sm:$0xff] }
  0x50   :  { %519 = vmatpush.msra.mxu1 %v281_v45  ;;  %539 = vmatpush.msra.mxu2 %v329_v50  ;;  %v243_v45 = vld [vmem:[#allocation8 + $0x100] sm:$0xff]  ;;  %v288_v50 = vld [vmem:[#allocation8 + $0x268] sm:$0xff] }
  0x51   :  { %500 = vmatpush.msra.mxu0 %v230_v48  ;;  %559 = vmatpush.msra.mxu3 %v377_v51  ;;  %v396_v48 = vld [vmem:[#allocation8 + $0x5c8] sm:$0xff]  ;;  %v345_v51 = vld [vmem:[#allocation8 + $0x430] sm:$0xff] }
  0x52   :  { %520 = vmatpush.msra.mxu1 %v278_v49  ;;  %540 = vmatpush.msra.mxu2 %v326_v54  ;;  %v240_v49 = vld [vmem:[#allocation8 + $0xe8] sm:$0xff]  ;;  %v285_v54 = vld [vmem:[#allocation8 + $0x250] sm:$0xff] }
  0x53   :  { %501 = vmatpush.msra.mxu0 %v227_v52  ;;  %560 = vmatpush.msra.mxu3 %v374_v55  ;;  %v393_v52 = vld [vmem:[#allocation8 + $0x5b0] sm:$0xff]  ;;  %v342_v55 = vld [vmem:[#allocation8 + $0x418] sm:$0xff] }
  0x54   :  { %521 = vmatpush.msra.mxu1 %v275_v53  ;;  %541 = vmatpush.msra.mxu2 %v323_v62  ;;  %v237_v53 = vld [vmem:[#allocation8 + $0xd0] sm:$0xff]  ;;  %v279_v62 = vld [vmem:[#allocation8 + $0x220] sm:$0xff] }
  0x55   :  { %502 = vmatpush.msra.mxu0 %v224_v56  ;;  %561 = vmatpush.msra.mxu3 %v371_v63  ;;  %v390_v56 = vld [vmem:[#allocation8 + $0x598] sm:$0xff]  ;;  %v336_v63 = vld [vmem:[#allocation8 + $0x3e8] sm:$0xff] }
  0x56   :  { %522 = vmatpush.msra.mxu1 %v272_v57  ;;  %542 = vmatpush.msra.mxu2 %v320_v2  ;;  %v234_v57 = vld [vmem:[#allocation8 + $0xb8] sm:$0xff]  ;;  %v276_v2 = vld [vmem:[#allocation8 + $0x208] sm:$0xff] }
  0x57   :  { %503 = vmatpush.msra.mxu0 %v221_v58  ;;  %562 = vmatpush.msra.mxu3 %v368_v3  ;;  %v282_v58 = vld [vmem:[#allocation8 + $0x238] sm:$0xff]  ;;  %v333_v3 = vld [vmem:[#allocation8 + $0x3d0] sm:$0xff] }
  0x58   :  { %523 = vmatpush.msra.mxu1 %v269_v59  ;;  %543 = vmatpush.msra.mxu2 %v317_v6  ;;  %v339_v59 = vld [vmem:[#allocation8 + $0x400] sm:$0xff]  ;;  %v273_v6 = vld [vmem:[#allocation8 + $0x1f0] sm:$0xff] }
  0x59   :  { %504 = vmatpush.msra.mxu0 %v218_v60  ;;  %563 = vmatpush.msra.mxu3 %v365_v7  ;;  %v387_v60 = vld [vmem:[#allocation8 + $0x580] sm:$0xff]  ;;  %v330_v7 = vld [vmem:[#allocation8 + $0x3b8] sm:$0xff] }
  0x5a   :  { %524 = vmatpush.msra.mxu1 %v266_v61  ;;  %544 = vmatpush.msra.mxu2 %v314_v8  ;;  %v231_v61 = vld [vmem:[#allocation8 + $0xa0] sm:$0xff]  ;;  %v378_v8 = vld [vmem:[#allocation8 + $0x538] sm:$0xff] }
  0x5b   :  { %505 = vmatpush.msra.mxu0 %v215_v0  ;;  %564 = vmatpush.msra.mxu3 %v362_v9  ;;  %v384_v0 = vld [vmem:[#allocation8 + $0x568] sm:$0xff]  ;;  %v222_v9 = vld [vmem:[#allocation8 + $0x58] sm:$0xff] }
  0x5c   :  { %525 = vmatpush.msra.mxu1 %v263_v1  ;;  %545 = vmatpush.msra.mxu2 %v311_v10  ;;  %v228_v1 = vld [vmem:[#allocation8 + $0x88] sm:$0xff]  ;;  %v270_v10 = vld [vmem:[#allocation8 + $0x1d8] sm:$0xff] }
  0x5d   :  { %506 = vmatpush.msra.mxu0 %v212_v4  ;;  %565 = vmatpush.msra.mxu3 %v359_v11  ;;  %v381_v4 = vld [vmem:[#allocation8 + $0x550] sm:$0xff]  ;;  %v327_v11 = vld [vmem:[#allocation8 + $0x3a0] sm:$0xff] }
  0x5e   :  { %526 = vmatpush.msra.mxu1 %v260_v5  ;;  %546 = vmatpush.msra.mxu2 %v308_v12  ;;  %v225_v5 = vld [vmem:[#allocation8 + $0x70] sm:$0xff]  ;;  %v375_v12 = vld [vmem:[#allocation8 + $0x520] sm:$0xff] }
  0x5f   :  { %566 = vmatpush.msra.mxu3 %v356_v13  ;;  %v219_v13 = vld [vmem:[#allocation8 + $0x40] sm:$0xff] }
  0x9a   :  { %v144_v17 = vpop.f32.mrf.mxu0 }
  0x9b   :  { %v164_v18 = vpop.f32.mrf.mxu1  ;;  %v145_v19 = vadd.f32 %v144_v17, %v102_v15  ;;  %v324_v15 = vld [vmem:[#allocation8 + $0x388] sm:$0xff] }
  0x9c   :  { %v165_v20 = vadd.f32 %v164_v18, %v103_v16  ;;  %v372_v16 = vld [vmem:[#allocation8 + $0x508] sm:$0xff] }
  0x9d   :  { %v867_v21 = vmax.f32 %v145_v19, 0.0  ;;  %v216_v17 = vld [vmem:[#allocation8 + $0x28] sm:$0xff]  ;;  %v321_v19 = vld [vmem:[#allocation8 + $0x370] sm:$0xff] }
  0x9e   :  { %v869_v22 = vmax.f32 %v165_v20, 0.0  ;;  %v264_v18 = vld [vmem:[#allocation8 + $0x1a8] sm:$0xff]  ;;  %v369_v20 = vld [vmem:[#allocation8 + $0x4f0] sm:$0xff] }
  0x9f   :  { %427 = vmatmul.f32.vlgmr.msrb.gmra.mxu0 %v867_v21 }
  0xa0   :  { %447 = vmatmul.f32.vlgmr.msrb.gmra.mxu1 %v869_v22  ;;  %571 = vmatpush.msrb.mxu0 %v258_v23  ;;  %v213_v23 = vld [vmem:[#allocation8 + $0x10] sm:$0xff] }
  0xa1   :  { %591 = vmatpush.msrb.mxu1 %v306_v24  ;;  %v184_v29 = vpop.f32.mrf.mxu2  ;;  %v261_v24 = vld [vmem:[#allocation8 + $0x190] sm:$0xff] }
  0xa2   :  { %v204_v30 = vpop.f32.mrf.mxu3  ;;  %v185_v33 = vadd.f32 %v184_v29, %v104_v25  ;;  %572 = vmatpush.msrb.mxu0 %v255_v27  ;;  %v318_v25 = vld [vmem:[#allocation8 + $0x358] sm:$0xff]  ;;  %v315_v27 = vld [vmem:[#allocation8 + $0x340] sm:$0xff]  ;;  %v312_v29 = vld [vmem:[#allocation8 + $0x328] sm:$0xff] }
  0xa3   :  { %v205_v34 = vadd.f32 %v204_v30, %v105_v26  ;;  %592 = vmatpush.msrb.mxu1 %v303_v28  ;;  %v366_v26 = vld [vmem:[#allocation8 + $0x4d8] sm:$0xff]  ;;  %v363_v28 = vld [vmem:[#allocation8 + $0x4c0] sm:$0xff]  ;;  %v360_v30 = vld [vmem:[#allocation8 + $0x4a8] sm:$0xff] }
  0xa4   :  { %v873_v35 = vmax.f32 %v185_v33, 0.0  ;;  %573 = vmatpush.msrb.mxu0 %v252_v31  ;;  %v309_v31 = vld [vmem:[#allocation8 + $0x310] sm:$0xff] }
  0xa5   :  { %v875_v36 = vmax.f32 %v205_v34, 0.0  ;;  %593 = vmatpush.msrb.mxu1 %v300_v32  ;;  %v357_v32 = vld [vmem:[#allocation8 + $0x490] sm:$0xff] }
  0xa6   :  { %467 = vmatmul.f32.vlgmr.msrb.gmra.mxu2 %v873_v35  ;;  %574 = vmatpush.msrb.mxu0 %v249_v37 }
  0xa7   :  { %487 = vmatmul.f32.vlgmr.msrb.gmra.mxu3 %v875_v36  ;;  %594 = vmatpush.msrb.mxu1 %v297_v38 }
  0xa8   :  { %611 = vmatpush.msrb.mxu2 %v354_v39  ;;  %631 = vmatpush.msrb.mxu3 %v402_v40 }
  0xa9   :  { %507 = vmatmul.f32.vlgmr.msra.gmra.mxu0 %v867_v21  ;;  %595 = vmatpush.msrb.mxu1 %v294_v41 }
  0xaa   :  { %575 = vmatpush.msrb.mxu0 %v246_v42  ;;  %612 = vmatpush.msrb.mxu2 %v351_v43 }
  0xab   :  { %632 = vmatpush.msrb.mxu3 %v399_v44  ;;  %527 = vmatmul.f32.vlgmr.msra.gmra.mxu1 %v869_v22 }
  0xac   :  { %576 = vmatpush.msrb.mxu0 %v243_v45  ;;  %596 = vmatpush.msrb.mxu1 %v291_v46 }
  0xad   :  { %613 = vmatpush.msrb.mxu2 %v348_v47  ;;  %633 = vmatpush.msrb.mxu3 %v396_v48 }
  0xae   :  { %577 = vmatpush.msrb.mxu0 %v240_v49  ;;  %597 = vmatpush.msrb.mxu1 %v288_v50 }
  0xaf   :  { %614 = vmatpush.msrb.mxu2 %v345_v51  ;;  %634 = vmatpush.msrb.mxu3 %v393_v52 }
  0xb0   :  { %547 = vmatmul.f32.vlgmr.msra.gmra.mxu2 %v873_v35  ;;  %567 = vmatmul.f32.vlgmr.msra.gmra.mxu3 %v875_v36 }
  0xb1   :  { %578 = vmatpush.msrb.mxu0 %v237_v53  ;;  %598 = vmatpush.msrb.mxu1 %v285_v54  ;;  %v654_v53 = vld [vmem:[%s901_s5] sm:$0x7] }
  0xb2   :  { %615 = vmatpush.msrb.mxu2 %v342_v55  ;;  %635 = vmatpush.msrb.mxu3 %v390_v56  ;;  %v657_v56 = vperm.slane %v654_v53, 1 }
  0xb3   :  { %579 = vmatpush.msrb.mxu0 %v234_v57  ;;  %599 = vmatpush.msrb.mxu1 %v282_v58 }
  0xb4   :  { %616 = vmatpush.msrb.mxu2 %v339_v59  ;;  %636 = vmatpush.msrb.mxu3 %v387_v60  ;;  %v656_v60 = vperm.slane %v654_v53, 0 }
  0xb5   :  { %580 = vmatpush.msrb.mxu0 %v231_v61  ;;  %600 = vmatpush.msrb.mxu1 %v279_v62 }
  0xb6   :  { %617 = vmatpush.msrb.mxu2 %v336_v63  ;;  %637 = vmatpush.msrb.mxu3 %v384_v0 }
  0xb7   :  { %581 = vmatpush.msrb.mxu0 %v228_v1  ;;  %601 = vmatpush.msrb.mxu1 %v276_v2  ;;  %v658_v1 = vperm.slane %v654_v53, 2 }
  0xb8   :  { %618 = vmatpush.msrb.mxu2 %v333_v3  ;;  %638 = vmatpush.msrb.mxu3 %v381_v4 }
  0xb9   :  { %582 = vmatpush.msrb.mxu0 %v225_v5  ;;  %602 = vmatpush.msrb.mxu1 %v273_v6 }
  0xba   :  { %619 = vmatpush.msrb.mxu2 %v330_v7  ;;  %639 = vmatpush.msrb.mxu3 %v378_v8  ;;  %v701_v8 = vld [vmem:[#allocation2] ss:$0 sm:$0xff] }
  0xbb   :  { %583 = vmatpush.msrb.mxu0 %v222_v9  ;;  %603 = vmatpush.msrb.mxu1 %v270_v10 }
  0xbc   :  { %620 = vmatpush.msrb.mxu2 %v327_v11  ;;  %640 = vmatpush.msrb.mxu3 %v375_v12 }
  0xbd   :  { %584 = vmatpush.msrb.mxu0 %v219_v13  ;;  %604 = vmatpush.msrb.mxu1 %v267_v14 }
  0xbe   :  { %621 = vmatpush.msrb.mxu2 %v324_v15  ;;  %641 = vmatpush.msrb.mxu3 %v372_v16 }
  0xbf   :  { %585 = vmatpush.msrb.mxu0 %v216_v17  ;;  %605 = vmatpush.msrb.mxu1 %v264_v18 }
  0xc0   :  { %622 = vmatpush.msrb.mxu2 %v321_v19  ;;  %642 = vmatpush.msrb.mxu3 %v369_v20 }
  0xc1   :  { %586 = vmatpush.msrb.mxu0 %v213_v23  ;;  %606 = vmatpush.msrb.mxu1 %v261_v24 }
  0xc2   :  { %623 = vmatpush.msrb.mxu2 %v318_v25  ;;  %643 = vmatpush.msrb.mxu3 %v366_v26 }
  0xc3   :  { %587 = vmatmul.f32.vlgmr.msrb.gmra.mxu0 %v867_v21  ;;  %607 = vmatmul.f32.vlgmr.msrb.gmra.mxu1 %v869_v22  ;;  %v403_v21 = vld [vmem:[%s900_s4] sm:$0x7] }
  0xc4   :  { %624 = vmatpush.msrb.mxu2 %v315_v27  ;;  %644 = vmatpush.msrb.mxu3 %v363_v28  ;;  %v405_v37 = vperm.slane %v403_v21, 0  ;;  %v406_v38 = vperm.slane %v403_v21, 1  ;;  %v407_v47 = vperm.slane %v403_v21, 2 }
  0xc6   :  { %625 = vmatpush.msrb.mxu2 %v312_v29  ;;  %645 = vmatpush.msrb.mxu3 %v360_v30 }
  0xc8   :  { %626 = vmatpush.msrb.mxu2 %v309_v31  ;;  %646 = vmatpush.msrb.mxu3 %v357_v32 }
  0xc9   :  { %627 = vmatmul.f32.vlgmr.msrb.gmra.mxu2 %v873_v35  ;;  %647 = vmatmul.f32.vlgmr.msrb.gmra.mxu3 %v875_v36 }
 0x11c   :  { %v428_v33 = vpop.f32.mrf.mxu0 }
 0x11d   :  { %v448_v34 = vpop.f32.mrf.mxu1  ;;  %v429_v41 = vadd.f32 %v428_v33, %v405_v37 }
 0x11f   :  { %v449_v45 = vadd.f32 %v448_v34, %v429_v41 }
 0x126   :  { %v508_v39 = vpop.f32.mrf.mxu0 }
 0x127   :  { %v509_v42 = vadd.f32 %v508_v39, %v406_v38 }
 0x128   :  { %v528_v43 = vpop.f32.mrf.mxu1 }
 0x129   :  { %v468_v22 = vpop.f32.mrf.mxu2  ;;  %v529_v46 = vadd.f32 %v528_v43, %v509_v42 }
 0x12a   :  { %v488_v40 = vpop.f32.mrf.mxu3  ;;  %v469_v48 = vadd.f32 %v468_v22, %v449_v45 }
 0x12c   :  { %v489_v52 = vadd.f32 %v488_v40, %v469_v48 }
 0x12e   :  { %v651_v59 = vmax.f32 %v489_v52, 0.0 }
 0x130   :  { %v662_v2 = vmul.f32 %v656_v60, %v651_v59 }
 0x133   :  { %v548_v44 = vpop.f32.mrf.mxu2  ;;  %v568_v49 = vpop.f32.mrf.mxu3 }
 0x134   :  { %v549_v35 = vadd.f32 %v548_v44, %v529_v46 }
 0x136   :  { %v569_v50 = vadd.f32 %v568_v49, %v549_v35 }
 0x138   :  { %v652_v55 = vmax.f32 %v569_v50, 0.0 }
 0x13a   :  { %v663_v63 = vmul.f32 %v657_v56, %v652_v55 }
 0x13c   :  { %v665_v5 = vadd.f32 %v663_v63, %v662_v2 }
 0x140   :  { %v588_v36 = vpop.f32.mrf.mxu0  ;;  %v608_v54 = vpop.f32.mrf.mxu1 }
 0x141   :  { %v589_v51 = vadd.f32 %v588_v36, %v407_v47 }
 0x143   :  { %v609_v57 = vadd.f32 %v608_v54, %v589_v51 }
 0x14c   :  { %v628_v58 = vpop.f32.mrf.mxu2  ;;  %v648_v62 = vpop.f32.mrf.mxu3 }
 0x14d   :  { %v629_v61 = vadd.f32 %v628_v58, %v609_v57 }
 0x14f   :  { %v649_v0 = vadd.f32 %v648_v62, %v629_v61 }
 0x151   :  { %v653_v3 = vmax.f32 %v649_v0, 0.0 }
 0x153   :  { %v664_v4 = vmul.f32 %v658_v1, %v653_v3 }
 0x155   :  { %v666_v6 = vadd.f32 %v665_v5, %v664_v4 }
 0x157   :  { %v668_v7 = vsel %vm667_vm2, %v666_v6, 0.0 }
 0x158   :  { %669 = vadd.xlane.f32.xlu0 %v668_v7 }
 0x1cb   :  { %v670_v9 = vpop.xlane.xlu0 %669 }
 0x1cc   :  { %v675_v10 = vadd.f32 %v701_v8, %v670_v9 }
 0x1ce   :  { %677 = vst.msk [vmem:[%s903_s7] sm:$0x3] %vm676_vm3, %v675_v10 }
 0x1cf   :  { %682 = vsyncpa [#allocation4], 1 }
 0x1d0   :  { %683 = vsyncpa [#allocation6], 1 }
 0x1d1   :  { %684 = vsyncpa [#allocation9], 1 }

</bundles_post_ra>
